<compile_context>
chip_gen: v5e
topology: v5e:2x2
jax: 0.10.0
libtpu: 0.0.40
codegen_flags: <defaults>
</compile_context>

<pallas_src>
import functools

import jax
import jax.numpy as jnp
from jax.experimental import pallas as pl
from jax.experimental.pallas import tpu as pltpu


# ----------------------------------------------------------------------------
# pltpu.roll sign probe: resolve the rotate convention once (compiled,
# on-device) so the in-kernel shift helpers are robust either way.
# ----------------------------------------------------------------------------
def probe_roll_sign():
    def kernel(x_ref, o_ref):
        o_ref[...] = pltpu.roll(x_ref[...], 1, axis=1)

    x = jnp.arange(8 * 128, dtype=jnp.float32).reshape(8, 128)
    r = pl.pallas_call(
        kernel, out_shape=jax.ShapeDtypeStruct((8, 128), jnp.float32))(x)
    return 1 if float(r[0, 1]) == 0.0 else -1


# ----------------------------------------------------------------------------
# Fused kernel: one grid step = one batch element, working set (C, H*W).
# ----------------------------------------------------------------------------
def _fused_attention_kernel(
        x_ref,
        w0h_ref, b0h_ref, w0v_ref, b0v_ref,
        wsh_ref, bsh_ref, wsv_ref, bsv_ref,
        w1_ref, b1_ref, fcatT_ref, wf_ref,
        whw_ref,
        gcw_max_ref, gcw_mean_ref, ghc_max_ref, ghc_mean_ref,
        scw_ref, shc_ref,
        emod_ref, ediv_ref, dsel_ref,
        emodT_ref, edivT_ref,
        gbias_ref,            # SMEM (3,): folded BN biases [hw, cw, hc]
        o_ref,
        *, H, W, lane_sign):
    C = x_ref.shape[1]
    HW = H * W

    lane = jax.lax.broadcasted_iota(jnp.int32, (1, HW), 1)
    w_idx = lane % W                                      # (1, HW)
    h_idx = lane // W                                     # (1, HW)

    def mxu(lhs, rhs):
        # HIGHEST precision -> full-f32 MXU passes (keeps 1e-3 tolerance).
        return jnp.dot(lhs, rhs, preferred_element_type=jnp.float32,
                       precision=jax.lax.Precision.HIGHEST)

    def roll_lane(v, s):        # out[.., l] = v[.., (l - s) mod n]
        amt = (s if lane_sign > 0 else -s) % v.shape[-1]
        return v if amt == 0 else pltpu.roll(v, amt, axis=1)

    # ---- zero-filled shifts along w / h (roll + memoised boundary mask) ----
    mask_cache = {}

    def boundary_mask(kind, s):
        key = (kind, s)
        if key not in mask_cache:
            idx, n = (w_idx, W) if kind == 'w' else (h_idx, H)
            mask_cache[key] = (idx < n - s) if s > 0 else (idx >= -s)
        return mask_cache[key]

    def shift_w(v, s):          # out[c,h,w] = v[c,h,w+s], zero outside
        if s == 0:
            return v
        return jnp.where(boundary_mask('w', s), roll_lane(v, -s), 0.0)

    def shift_h(v, s):          # out[c,h,w] = v[c,h+s,w], zero outside
        if s == 0:
            return v
        return jnp.where(boundary_mask('h', s), roll_lane(v, -s * W), 0.0)

    def sigmoid(v):             # only applied to tiny compacted maps now
        return 1.0 / (1.0 + jnp.exp(-v))

    # ======================== LSKA depthwise chain ===========================
    def dwconv(v, w_ref2, b_ref2, taps, dil, shift_fn):
        half = (taps - 1) // 2
        w = w_ref2[...]                                   # (C, taps)
        acc = shift_fn(v, -half * dil) * w[:, 0:1]
        for k in range(1, taps):
            acc = acc + shift_fn(v, (k - half) * dil) * w[:, k:k + 1]
        return acc + b_ref2[...]                          # (C, 1) bias

    attn = dwconv(x_ref[0], w0h_ref, b0h_ref, 5, 1, shift_w)   # conv0h (1,5)
    attn = dwconv(attn, w0v_ref, b0v_ref, 5, 1, shift_h)       # conv0v (5,1)
    attn = dwconv(attn, wsh_ref, bsh_ref, 7, 3, shift_w)       # spatial_h d=3
    attn = dwconv(attn, wsv_ref, bsv_ref, 7, 3, shift_h)       # spatial_v d=3

    # ================== LSKA 1x1 conv (MXU) + u * attn =======================
    pw = mxu(w1_ref[...], attn) + b1_ref[...]             # (C, HW)
    lska = x_ref[0] * pw

    # ============================== SELayer ==================================
    y = jnp.mean(lska, axis=1, keepdims=True)             # (C, 1)
    ycat = jnp.maximum(
        jnp.sum(fcatT_ref[...] * y, axis=0, keepdims=True), 0.0)      # (1, 4Cr)
    logits = jnp.sum(wf_ref[...] * ycat, axis=1, keepdims=True)       # (C, 1)
    a = lska * sigmoid(logits)                                         # (C, HW)

    # ================= TripletAttention: hw gate (over H, W) =================
    zmax = jnp.max(a, axis=0, keepdims=True)              # (1, HW)
    zmean = jnp.mean(a, axis=0, keepdims=True)            # (1, HW)
    row = jax.lax.broadcasted_iota(jnp.int32, (2, 1), 0)
    z2 = jnp.where(row == 0, zmax, zmean)                 # (2, HW) packed
    whw = whw_ref[...]                                    # (2, 49)
    acc2 = jnp.zeros((2, HW), jnp.float32)
    for kh in range(7):
        zh = shift_h(z2, kh - 3)                          # hoisted out of kw
        for kw in range(7):
            t = kh * 7 + kw
            acc2 = acc2 + shift_w(zh, kw - 3) * whw[:, t:t + 1]
    s_hw = sigmoid(jnp.sum(acc2, axis=0, keepdims=True) + gbias_ref[0])

    # ================= pooled compacted maps for cw / hc =====================
    # max over h -> (C, W): butterfly cyclic all-reduce then take slab 0
    r = a
    k = 1
    while k < H:
        r = jnp.maximum(r, roll_lane(r, k * W))
        k *= 2
    pmax_cw = r[:, :W]                                    # (C, W)
    pmean_cw = mxu(a, emod_ref[...]) * (1.0 / H)          # (C, W)

    # max over w -> (C, H): segmented butterfly then strided extraction (MXU)
    def seg_roll_w(v, kk):      # cyclic roll by kk within each W-group
        return jnp.where(w_idx < W - kk, roll_lane(v, -kk), roll_lane(v, W - kk))

    r = a
    k = 1
    while k < W:
        r = jnp.maximum(r, seg_roll_w(r, k))
        k *= 2
    pmax_hc = mxu(r, dsel_ref[...])                       # (C, H)
    pmean_hc = mxu(a, ediv_ref[...]) * (1.0 / W)          # (C, H)

    # ================= cw gate: 7x7 conv on compacted (C, W) =================
    # C-axis taps folded into banded matrices, W-axis taps into shift matmuls.
    Rcw = mxu(gcw_max_ref[...], pmax_cw) + mxu(gcw_mean_ref[...], pmean_cw)
    o_cw = mxu(Rcw[0:C, :], scw_ref[0])
    for b in range(1, 7):
        o_cw = o_cw + mxu(Rcw[b * C:(b + 1) * C, :], scw_ref[b])
    s_cw = sigmoid(o_cw + gbias_ref[1])                   # (C, W)

    # ================= hc gate: 7x7 conv on compacted (C, H) =================
    Rhc = mxu(ghc_max_ref[...], pmax_hc) + mxu(ghc_mean_ref[...], pmean_hc)
    o_hc = mxu(Rhc[0:C, :], shc_ref[0])
    for aa in range(1, 7):
        o_hc = o_hc + mxu(Rhc[aa * C:(aa + 1) * C, :], shc_ref[aa])
    s_hc = sigmoid(o_hc + gbias_ref[2])                   # (C, H)

    # ============== broadcast back (0/1 matmuls) and combine =================
    s_cwhc = mxu(s_cw, emodT_ref[...]) + mxu(s_hc, edivT_ref[...])   # (C, HW)
    out = a * ((s_hw + s_cwhc) * (1.0 / 3.0))
    o_ref[0] = out.astype(o_ref.dtype)


# ----------------------------------------------------------------------------
# Host-side derived constants (band / shift / pooling / broadcast matrices).
# ----------------------------------------------------------------------------
def _derived_constants(gate_w, C, H, W):
    HW = H * W
    g = gate_w[:, :98].reshape(3, 2, 7, 7)                # BN already folded
    gbias = gate_w[:, 98].astype(jnp.float32)

    def band(taps7):            # (7,) -> (C, C) band matrix over the C axis
        c = jnp.arange(C)
        diff = c[None, :] - c[:, None] + 3
        valid = (diff >= 0) & (diff <= 6)
        return jnp.where(valid, taps7[jnp.clip(diff, 0, 6)], 0.0).astype(jnp.float32)

    # cw gate: band over C uses kernel row index kh; column blocks index kw.
    gcw_max = jnp.concatenate([band(g[1, 0, :, b]) for b in range(7)], axis=0)
    gcw_mean = jnp.concatenate([band(g[1, 1, :, b]) for b in range(7)], axis=0)
    # hc gate: band over C uses kernel col index kw; blocks index kh.
    ghc_max = jnp.concatenate([band(g[2, 0, a, :]) for a in range(7)], axis=0)
    ghc_mean = jnp.concatenate([band(g[2, 1, a, :]) for a in range(7)], axis=0)

    wi = jnp.arange(W)
    hi = jnp.arange(H)
    scw = jnp.stack([(wi[:, None] == wi[None, :] + (b - 3)).astype(jnp.float32)
                     for b in range(7)])                  # (7, W, W)
    shc = jnp.stack([(hi[:, None] == hi[None, :] + (a - 3)).astype(jnp.float32)
                     for a in range(7)])                  # (7, H, H)

    l = jnp.arange(HW)
    emod = (l[:, None] % W == wi[None, :]).astype(jnp.float32)   # (HW, W)
    ediv = (l[:, None] // W == hi[None, :]).astype(jnp.float32)  # (HW, H)
    dsel = (l[:, None] == (hi * W)[None, :]).astype(jnp.float32)  # (HW, H)

    return dict(whw=g[0].reshape(2, 49).astype(jnp.float32),
                gcw_max=gcw_max, gcw_mean=gcw_mean,
                ghc_max=ghc_max, ghc_mean=ghc_mean,
                scw=scw, shc=shc,
                emod=emod, ediv=ediv, dsel=dsel,
                emodT=emod.T, edivT=ediv.T,
                gbias=gbias)


# ----------------------------------------------------------------------------
# Wrapper
# ----------------------------------------------------------------------------
def _const_spec(shape):
    nd = len(shape)
    return pl.BlockSpec(shape, lambda b, _nd=nd: (0,) * _nd)


def new_attention_forward(x_nchw, p, lane_sign):
    B, C, H, W = x_nchw.shape
    # Butterfly max-pools assume power-of-two spatial dims.
    assert H & (H - 1) == 0 and W & (W - 1) == 0
    HW = H * W
    Cr4 = p['fcatT'].shape[1]

    d = _derived_constants(p['gate_w'], C, H, W)
    x2 = x_nchw.reshape(B, C, HW)      # free view; per-batch layout (C, H*W)

    kernel = functools.partial(_fused_attention_kernel, H=H, W=W,
                               lane_sign=lane_sign)
    out = pl.pallas_call(
        kernel,
        out_shape=jax.ShapeDtypeStruct((B, C, HW), jnp.float32),
        grid=(B,),
        in_specs=[
            pl.BlockSpec((1, C, HW), lambda b: (b, 0, 0)),
            _const_spec((C, 5)), _const_spec((C, 1)),
            _const_spec((C, 5)), _const_spec((C, 1)),
            _const_spec((C, 7)), _const_spec((C, 1)),
            _const_spec((C, 7)), _const_spec((C, 1)),
            _const_spec((C, C)), _const_spec((C, 1)),
            _const_spec((C, Cr4)), _const_spec((C, Cr4)),
            _const_spec((2, 49)),
            _const_spec((7 * C, C)), _const_spec((7 * C, C)),
            _const_spec((7 * C, C)), _const_spec((7 * C, C)),
            _const_spec((7, W, W)), _const_spec((7, H, H)),
            _const_spec((HW, W)), _const_spec((HW, H)), _const_spec((HW, H)),
            _const_spec((W, HW)), _const_spec((H, HW)),
            pl.BlockSpec(memory_space=pltpu.MemorySpace.SMEM),
        ],
        out_specs=pl.BlockSpec((1, C, HW), lambda b: (b, 0, 0)),
        compiler_params=pltpu.CompilerParams(
            # batch iterations are independent -> shard across v7x's 2 cores
            dimension_semantics=("parallel",),
        ),
    )(x2,
      p['w0h'], p['b0h'], p['w0v'], p['b0v'],
      p['wsh'], p['bsh'], p['wsv'], p['bsv'],
      p['w1'], p['b1'], p['fcatT'], p['wf'],
      d['whw'],
      d['gcw_max'], d['gcw_mean'], d['ghc_max'], d['ghc_mean'],
      d['scw'], d['shc'],
      d['emod'], d['ediv'], d['dsel'],
      d['emodT'], d['edivT'],
      d['gbias'])
    return out.reshape(B, C, H, W)


# ----------------------------------------------------------------------------
# Parameters (freshly-initialised shapes matching the PyTorch module)
# ----------------------------------------------------------------------------
def init_params(key, C, reduction=16):
    Cr = C // reduction
    ks = jax.random.split(key, 15)

    def rnd(k, shape, scale=0.1):
        return jax.random.normal(k, shape, jnp.float32) * scale

    p = {}
    # LSKA depthwise convs: weights (C, taps), biases (C, 1)
    p['w0h'], p['b0h'] = rnd(ks[0], (C, 5)), rnd(ks[1], (C, 1))
    p['w0v'], p['b0v'] = rnd(ks[2], (C, 5)), rnd(ks[3], (C, 1))
    p['wsh'], p['bsh'] = rnd(ks[4], (C, 7)), rnd(ks[5], (C, 1))
    p['wsv'], p['bsv'] = rnd(ks[6], (C, 7)), rnd(ks[7], (C, 1))
    # LSKA 1x1 conv: (C_out, C_in) + bias
    p['w1'], p['b1'] = rnd(ks[8], (C, C)), rnd(ks[9], (C, 1))
    # SELayer: four (Cr, C) branch weights pre-concatenated, stored transposed
    # as (C, 4Cr) so channels stay on sublanes inside the kernel.
    p['fcatT'] = rnd(ks[10], (4 * Cr, C)).T               # (C, 4Cr)
    p['wf'] = rnd(ks[11], (C, 4 * Cr))                    # fc.weight (out, in)
    # TripletAttention gates: 7x7 conv (1,2,7,7) bias=False, BN folded
    # (eval mode, default running stats).  Row order: [hw, cw, hc].
    gamma, beta, rmean, rvar, eps = 1.0, 0.0, 0.0, 1.0, 1e-5
    bn_a = gamma / ((rvar + eps) ** 0.5)
    rows = []
    for i in range(3):
        taps = (rnd(ks[12 + i], (2, 7, 7)) * bn_a).reshape(-1)       # (98,)
        bias = jnp.array([beta - rmean * bn_a], jnp.float32)         # (1,)
        rows.append(jnp.concatenate([taps, bias]))
    p['gate_w'] = jnp.stack(rows, axis=0)                            # (3, 99)
    return p


# ----------------------------------------------------------------------------
# Pure-JAX reference (same math, NCHW layout) for the correctness check.
# ----------------------------------------------------------------------------
def _shift0(x, s, axis):
    """Zero-filled shift: out[..., i, ...] = x[..., i+s, ...]."""
    if s == 0:
        return x
    zshape = list(x.shape)
    zshape[axis] = abs(s)
    zeros = jnp.zeros(zshape, x.dtype)
    idx = [slice(None)] * x.ndim
    if s > 0:
        idx[axis] = slice(s, None)
        return jnp.concatenate([x[tuple(idx)], zeros], axis=axis)
    idx[axis] = slice(None, s)
    return jnp.concatenate([zeros, x[tuple(idx)]], axis=axis)


def reference_forward(x, p):
    B, C, H, W = x.shape

    def dwconv(v, w, b, taps, dil, axis):
        half = (taps - 1) // 2
        acc = jnp.zeros_like(v)
        for k in range(taps):
            s = (k - half) * dil
            acc = acc + _shift0(v, s, axis) * w[:, k][None, :, None, None]
        return acc + b[:, 0][None, :, None, None]

    attn = dwconv(x, p['w0h'], p['b0h'], 5, 1, 3)
    attn = dwconv(attn, p['w0v'], p['b0v'], 5, 1, 2)
    attn = dwconv(attn, p['wsh'], p['bsh'], 7, 3, 3)
    attn = dwconv(attn, p['wsv'], p['bsv'], 7, 3, 2)
    pw = jnp.zeros_like(attn)
    for c in range(C):
        pw = pw + p['w1'][:, c][None, :, None, None] * attn[:, c][:, None, :, :]
    pw = pw + p['b1'][:, 0][None, :, None, None]
    lska = x * pw

    y = jnp.mean(lska, axis=(2, 3))                                         # (B, C)
    ycat = jnp.maximum(jnp.sum(y[:, :, None] * p['fcatT'][None], axis=1), 0.0)
    logits = jnp.sum(ycat[:, None, :] * p['wf'][None], axis=2)              # (B, C)
    se = 1.0 / (1.0 + jnp.exp(-logits))
    a = lska * se[:, :, None, None]

    def gate(z, gw):                                       # z: (B, 2, S1, S2)
        acc = jnp.zeros(z.shape[:1] + z.shape[2:], jnp.float32)
        for ci in range(2):
            for kh in range(7):
                for kw in range(7):
                    sh = _shift0(_shift0(z[:, ci], kh - 3, 1), kw - 3, 2)
                    acc = acc + sh * gw[ci * 49 + kh * 7 + kw]
        return 1.0 / (1.0 + jnp.exp(-(acc + gw[98])))

    s_hw = gate(jnp.stack([jnp.max(a, 1), jnp.mean(a, 1)], 1), p['gate_w'][0])   # (B,H,W)
    s_cw = gate(jnp.stack([jnp.max(a, 2), jnp.mean(a, 2)], 1), p['gate_w'][1])   # (B,C,W)
    z_hc = jnp.stack([jnp.max(a, 3), jnp.mean(a, 3)], 1).transpose(0, 1, 3, 2)   # (B,2,H,C)
    s_hc = gate(z_hc, p['gate_w'][2])                                            # (B,H,C)

    scale = (s_hw[:, None, :, :] + s_cw[:, :, None, :]
             + jnp.transpose(s_hc, (0, 2, 1))[:, :, :, None])
    return a * (scale * (1.0 / 3.0))


if __name__ == "__main__":
    B, C, H, W = 2, 32, 16, 16     # C=32 so SELayer reduction=16 is valid
    key = jax.random.PRNGKey(0)
    kx, kp = jax.random.split(key)
    x = jax.random.normal(kx, (B, C, H, W), jnp.float32)
    params = init_params(kp, C)

    lane_sign = probe_roll_sign()

    out = jax.block_until_ready(new_attention_forward(x, params, lane_sign))
    assert out.shape == (B, C, H, W) and out.dtype == jnp.float32

    ref = jax.block_until_ready(jax.jit(reference_forward)(x, params))
    max_err = float(jnp.max(jnp.abs(out - ref)))
    assert max_err < 1e-3, f"kernel/reference mismatch: max_err={max_err}"

    print("KERNEL_OK")
</pallas_src>

<mosaic_0001>
module attributes {stable_mosaic.version = 11 : i64} {
  func.func @kernel(%arg0: memref<8x128xf32, #tpu.memory_space<vmem>>, %arg1: memref<8x128xf32, #tpu.memory_space<vmem>>) attributes {dimension_semantics = [], scalar_prefetch = 0 : i64, scratch_operands = 0 : i64, tpu.core_type = #tpu.core_type<tc>} {
    %c0 = arith.constant 0 : index
    %c0_0 = arith.constant 0 : index
    %0 = vector.load %arg0[%c0, %c0_0] : memref<8x128xf32, #tpu.memory_space<vmem>>, vector<8x128xf32>
    %c1_i32 = arith.constant 1 : i32
    %1 = tpu.dynamic_rotate %0 by %c1_i32 dim 1 : vector<8x128xf32>, i32 -> vector<8x128xf32>
    %c0_1 = arith.constant 0 : index
    %c0_2 = arith.constant 0 : index
    %2 = vector.load %arg1[%c0_1, %c0_2] : memref<8x128xf32, #tpu.memory_space<vmem>>, vector<8x128xf32>
    tpu.vector_store %arg1[%c0_1, %c0_2], %1 {strides = array<i32>} : memref<8x128xf32, #tpu.memory_space<vmem>>, vector<8x128xf32>,
    return
  }
}

</mosaic_0001>

<bundles_post_ra>
// kernel: tpu_custom_call.1
= control target key start
LH: loop header
LB: loop body
LE: loop exit
PB: predicated region body
PF: predicated region fallthrough
CT: control target
= control target key end

     0   :  { %6 = vsyncpa [#allocation3], 0  ;;  %s118_s0 = inlined_call_operand.hbm [shape: f32[8,128], index: 0, kind: input, shape index: {}]   ;;  %s119_s1 = inlined_call_operand.hbm [shape: f32[8,128], index: 1, kind: output, shape index: {}]  }
   0x1   :  { %7 = vsyncpa [#allocation4], 0  ;;  %s13_s8 = sshll.u32 %s118_s0, 4  ;;  %s99_s9 = smov [#allocation2]   ;;  %s14_s8 = int_to_ptr.hbm [resolvable:$true] %s13_s8 }
   0x2   :  { %s15_s10 = sshll.u32 %s99_s9, 4  ;;  %s16_s10 = int_to_ptr.vmem [resolvable:$true] %s15_s10 }
   0x3   :  { %18 = dma.hbm_to_vmem [thread:$0]  %s14_s8, 128, %s16_s10, [#allocation3]  }
   0x4   :  { %95 = dma.done.wait [#allocation3], 128  }
   0x5   :  { %96 = vsyncadd [#allocation3], 4294967168  ;;  %v23_v0 = vld [vmem:[#allocation2] sm:$0xff]  ;;  %s100_s11 = smov 1   ;;  %s101_s12 = smov [#allocation5]  }
   0x6   :  { %24 = vrot.lane.b32.xlu0 %v23_v0, %s100_s11  ;;  %s32_s13 = sshll.u32 %s101_s12, 4  ;;  %s34_s16 = sshll.u32 %s119_s1, 4  ;;  %s33_s13 = int_to_ptr.vmem [resolvable:$true] %s32_s13  ;;  %s35_s16 = int_to_ptr.hbm [resolvable:$true] %s34_s16 }
  0x78   :  { %v25_v1 = vpop.permute.xlu0 %24 }
  0x79   :  { %26 = vst [vmem:[#allocation5] sm:$0xff] %v25_v1 }
  0x7a   :  { %37 = dma.vmem_to_hbm [thread:$0]  %s33_s13, 128, %s35_s16, [#allocation4]  }
  0x7b   :  { %97 = dma.done.wait [#allocation4], 128  }
  0x7c   :  { %98 = vsyncadd [#allocation4], 4294967168 }
  0x7d   :  { %42 = vsyncpa [#allocation3], 1 }
  0x7e   :  { %43 = vsyncpa [#allocation4], 1 }

</bundles_post_ra>
